<compile_context>
chip_gen: v7x
topology: tpu7x:2x2x1
jax: 0.10.0
libtpu: 0.0.40
codegen_flags: <defaults>
</compile_context>

<pallas_src>
import jax
import jax.numpy as jnp
from jax.experimental import pallas as pl
from jax.experimental.pallas import tpu as pltpu

SUBLANE = 8       # sublane tiling unit (batch/row axis)
HIDDEN = 128      # module's hidden width (lane-aligned)
MAX_TB = 1024     # max batch-tile rows


def _round_up(n, m):
    return ((n + m - 1) // m) * m


# ----------------------------------------------------------------------------
# Kernels
# ----------------------------------------------------------------------------
def encoder_kernel(x_ref, w1_ref, b1_ref, w2_ref, b2_ref, o_ref):
    """forward(): lifted = Linear2(relu(Linear1(x))).  bf16 operands, f32 accum."""
    x = x_ref[...].astype(jnp.bfloat16)
    h = jnp.dot(x, w1_ref[...], preferred_element_type=jnp.float32) + b1_ref[...]
    h = jnp.maximum(h, 0.0).astype(jnp.bfloat16)
    lifted = jnp.dot(h, w2_ref[...], preferred_element_type=jnp.float32) + b2_ref[...]
    o_ref[...] = lifted.astype(o_ref.dtype)


def fused_kernel(x_ref, w1_ref, b1_ref, w2_ref, b2_ref,
                 kd_ref, db1_ref, dw2_ref, db2_ref,
                 lift_ref, next_ref, recon_ref):
    """Fused encode -> (lifted, lifted@K, decoder(lifted)); lifted never leaves VMEM.

    kd_ref holds [dw1 | K] (L, 128+L) so the Koopman step and decoder-layer-1 share a
    single MXU pass; the split at column 128 is lane-aligned.
    """
    H = db1_ref.shape[-1]                       # 128

    # encoder
    x = x_ref[...].astype(jnp.bfloat16)
    h = jnp.dot(x, w1_ref[...], preferred_element_type=jnp.float32) + b1_ref[...]
    h = jnp.maximum(h, 0.0).astype(jnp.bfloat16)
    lifted = jnp.dot(h, w2_ref[...], preferred_element_type=jnp.float32) + b2_ref[...]
    lift_ref[...] = lifted.astype(lift_ref.dtype)

    # joint (Koopman step | decoder layer-1) on one load of `lifted`
    both = jnp.dot(lifted.astype(jnp.bfloat16), kd_ref[...],
                   preferred_element_type=jnp.float32)
    next_ref[...] = both[:, H:].astype(next_ref.dtype)          # lifted @ K
    h2 = jnp.maximum(both[:, :H] + db1_ref[...], 0.0).astype(jnp.bfloat16)

    # decoder layer-2
    rec = jnp.dot(h2, dw2_ref[...], preferred_element_type=jnp.float32) + db2_ref[...]
    recon_ref[...] = rec.astype(recon_ref.dtype)


# ----------------------------------------------------------------------------
# BlockSpec / tiling helpers
# ----------------------------------------------------------------------------
def _resident(shape):
    # Weights / biases: same block for every batch tile -> stays VMEM-resident.
    return pl.BlockSpec(shape, lambda i: (0, 0))


def _batched(tb, cols):
    # x / outputs: tiled along the batch (sublane) axis, full (narrow) lane width.
    return pl.BlockSpec((tb, cols), lambda i: (i, 0))


def _batch_tiling(batch):
    """Pad batch only to a multiple of 8; pick a tile that divides it exactly.

    Prefers a tiling with >= 2 grid steps (when one exists) so the "parallel"
    batch axis can be sharded across both v7x TensorCores; caps tiles at MAX_TB.
    """
    bp = _round_up(batch, SUBLANE)
    m = bp // SUBLANE
    cap = max(MAX_TB // SUBLANE, 1)
    divisors = [d for d in range(1, min(m, cap) + 1) if m % d == 0]
    two_step = [d for d in divisors if d <= m // 2]
    d = max(two_step) if (m >= 2 and two_step) else max(divisors)
    return d * SUBLANE, bp


# ----------------------------------------------------------------------------
# Parameter prep: bf16 weights (f32 biases), [dw1 | K] concat.  No lane padding.
# ----------------------------------------------------------------------------
def prepare_params(params, weight_dtype=jnp.bfloat16):
    kd = jnp.concatenate([params["dw1"], params["K"]], axis=1)   # (L, 128 + L)
    return dict(
        w1=params["w1"].astype(weight_dtype),
        b1=params["b1"],
        w2=params["w2"].astype(weight_dtype),
        b2=params["b2"],
        kd=kd.astype(weight_dtype),
        db1=params["db1"],
        dw2=params["dw2"].astype(weight_dtype),
        db2=params["db2"],
    )


# ----------------------------------------------------------------------------
# Wrappers
# ----------------------------------------------------------------------------
def koopman_forward(state, pp):
    """Module forward(): encoder only. Returns (B, lifted_size) in f32."""
    B, S = state.shape
    H = pp["w1"].shape[1]
    L = pp["w2"].shape[1]
    tb, bp = _batch_tiling(B)
    x = state if bp == B else jnp.pad(state, ((0, bp - B), (0, 0)))
    out = pl.pallas_call(
        encoder_kernel,
        out_shape=jax.ShapeDtypeStruct((bp, L), state.dtype),
        grid=(bp // tb,),
        in_specs=[
            _batched(tb, S),
            _resident((S, H)), _resident((1, H)),
            _resident((H, L)), _resident((1, L)),
        ],
        out_specs=_batched(tb, L),
        compiler_params=pltpu.CompilerParams(dimension_semantics=("parallel",)),
    )(x, pp["w1"], pp["b1"], pp["w2"], pp["b2"])
    return out if bp == B else out[:B]


def koopman_forward_predict_reconstruct(state, pp):
    """Fused full path: returns (lifted, next_lifted, reconstructed)."""
    B, S = state.shape
    H = pp["w1"].shape[1]
    L = pp["w2"].shape[1]
    tb, bp = _batch_tiling(B)
    x = state if bp == B else jnp.pad(state, ((0, bp - B), (0, 0)))
    lift, nxt, rec = pl.pallas_call(
        fused_kernel,
        out_shape=(
            jax.ShapeDtypeStruct((bp, L), state.dtype),
            jax.ShapeDtypeStruct((bp, L), state.dtype),
            jax.ShapeDtypeStruct((bp, S), state.dtype),
        ),
        grid=(bp // tb,),
        in_specs=[
            _batched(tb, S),
            _resident((S, H)), _resident((1, H)),
            _resident((H, L)), _resident((1, L)),
            _resident((L, H + L)),
            _resident((1, H)),
            _resident((H, S)), _resident((1, S)),
        ],
        out_specs=(
            _batched(tb, L),
            _batched(tb, L),
            _batched(tb, S),
        ),
        compiler_params=pltpu.CompilerParams(dimension_semantics=("parallel",)),
    )(x, pp["w1"], pp["b1"], pp["w2"], pp["b2"],
      pp["kd"], pp["db1"], pp["dw2"], pp["db2"])
    if bp != B:
        lift, nxt, rec = lift[:B], nxt[:B], rec[:B]
    return lift, nxt, rec


# ----------------------------------------------------------------------------
# Deterministic parameter init (nn.Linear-style, weights stored (in, out))
# ----------------------------------------------------------------------------
def init_params(key, state_size, lifted_size, hidden=HIDDEN, dtype=jnp.float32):
    ks = jax.random.split(key, 5)

    def lin(k, fan_in, fan_out):
        bound = 1.0 / jnp.sqrt(fan_in)
        kw, kb = jax.random.split(k)
        w = jax.random.uniform(kw, (fan_in, fan_out), dtype, -bound, bound)
        b = jax.random.uniform(kb, (1, fan_out), dtype, -bound, bound)
        return w, b

    w1, b1 = lin(ks[0], state_size, hidden)
    w2, b2 = lin(ks[1], hidden, lifted_size)
    dw1, db1 = lin(ks[2], lifted_size, hidden)
    dw2, db2 = lin(ks[3], hidden, state_size)
    K = jax.random.normal(ks[4], (lifted_size, lifted_size), dtype)
    return dict(w1=w1, b1=b1, w2=w2, b2=b2,
                dw1=dw1, db1=db1, dw2=dw2, db2=db2, K=K)


# ----------------------------------------------------------------------------
# Main
# ----------------------------------------------------------------------------
if __name__ == "__main__":
    state_size = 16
    lifted_size = 32
    batch = 8

    key = jax.random.PRNGKey(0)
    kp, kx = jax.random.split(key)
    params = init_params(kp, state_size, lifted_size)
    pp = prepare_params(params)                      # prepared once (reused across calls)
    state = jax.random.normal(kx, (batch, state_size), jnp.float32)

    # Single fused launch: encode + predict_next_lifted + reconstruct.
    # (koopman_forward() implements the module's forward() for standalone use; it is
    #  NOT launched here because lift_f below is already exactly that result.)
    lift_f, nxt_f, rec_f = jax.tree_util.tree_map(
        jax.block_until_ready,
        koopman_forward_predict_reconstruct(state, pp))

    # Pure-JAX reference with matching precision: bf16 dot operands, f32 accumulation.
    def bdot(a, b):
        return jnp.dot(a.astype(jnp.bfloat16), b.astype(jnp.bfloat16),
                       preferred_element_type=jnp.float32)

    h_ref = jnp.maximum(bdot(state, params["w1"]) + params["b1"], 0.0)
    lifted_ref = bdot(h_ref, params["w2"]) + params["b2"]
    next_ref = bdot(lifted_ref, params["K"])
    h2_ref = jnp.maximum(bdot(lifted_ref, params["dw1"]) + params["db1"], 0.0)
    rec_ref = bdot(h2_ref, params["dw2"]) + params["db2"]

    assert lift_f.shape == (batch, lifted_size)
    assert nxt_f.shape == (batch, lifted_size)
    assert rec_f.shape == (batch, state_size)
    assert jnp.allclose(lift_f, lifted_ref, atol=1e-2, rtol=1e-2)
    assert jnp.allclose(nxt_f, next_ref, atol=2e-2, rtol=2e-2)
    assert jnp.allclose(rec_f, rec_ref, atol=2e-2, rtol=2e-2)

    print("KERNEL_OK")
</pallas_src>

<mosaic_0001>
module attributes {stable_mosaic.version = 11 : i64} {
  func.func @fused_kernel(%arg0: i32, %arg1: memref<8x16xf32, #tpu.memory_space<vmem>>, %arg2: memref<16x128xbf16, #tpu.memory_space<vmem>>, %arg3: memref<1x128xf32, #tpu.memory_space<vmem>>, %arg4: memref<128x32xbf16, #tpu.memory_space<vmem>>, %arg5: memref<1x32xf32, #tpu.memory_space<vmem>>, %arg6: memref<32x160xbf16, #tpu.memory_space<vmem>>, %arg7: memref<1x128xf32, #tpu.memory_space<vmem>>, %arg8: memref<128x16xbf16, #tpu.memory_space<vmem>>, %arg9: memref<1x16xf32, #tpu.memory_space<vmem>>, %arg10: memref<8x32xf32, #tpu.memory_space<vmem>>, %arg11: memref<8x32xf32, #tpu.memory_space<vmem>>, %arg12: memref<8x16xf32, #tpu.memory_space<vmem>>) attributes {dimension_semantics = [#tpu.dimension_semantics<parallel>], iteration_bounds = array<i64: 1>, scalar_prefetch = 0 : i64, scratch_operands = 0 : i64, tpu.core_type = #tpu.core_type<tc>, window_params = [{transform_indices = @transform_0, window_bounds = array<i64: 8, 16>}, {pipeline_mode = #tpu.pipeline_mode<synchronous>, transform_indices = @transform_1, window_bounds = array<i64: 16, 128>}, {pipeline_mode = #tpu.pipeline_mode<synchronous>, transform_indices = @transform_2, window_bounds = array<i64: 1, 128>}, {pipeline_mode = #tpu.pipeline_mode<synchronous>, transform_indices = @transform_3, window_bounds = array<i64: 128, 32>}, {pipeline_mode = #tpu.pipeline_mode<synchronous>, transform_indices = @transform_4, window_bounds = array<i64: 1, 32>}, {pipeline_mode = #tpu.pipeline_mode<synchronous>, transform_indices = @transform_5, window_bounds = array<i64: 32, 160>}, {pipeline_mode = #tpu.pipeline_mode<synchronous>, transform_indices = @transform_6, window_bounds = array<i64: 1, 128>}, {pipeline_mode = #tpu.pipeline_mode<synchronous>, transform_indices = @transform_7, window_bounds = array<i64: 128, 16>}, {pipeline_mode = #tpu.pipeline_mode<synchronous>, transform_indices = @transform_8, window_bounds = array<i64: 1, 16>}, {transform_indices = @transform_9, window_bounds = array<i64: 8, 32>}, {transform_indices = @transform_10, window_bounds = array<i64: 8, 32>}, {transform_indices = @transform_11, window_bounds = array<i64: 8, 16>}]} {
    %c0 = arith.constant 0 : index
    %c0_0 = arith.constant 0 : index
    %0 = vector.load %arg1[%c0, %c0_0] : memref<8x16xf32, #tpu.memory_space<vmem>>, vector<8x16xf32>
    %1 = arith.truncf %0 : vector<8x16xf32> to vector<8x16xbf16>
    %c0_1 = arith.constant 0 : index
    %c0_2 = arith.constant 0 : index
    %2 = vector.load %arg2[%c0_1, %c0_2] : memref<16x128xbf16, #tpu.memory_space<vmem>>, vector<16x128xbf16>
    %cst = arith.constant dense<0.000000e+00> : vector<8x128xf32>
    %3 = tpu.matmul %1, %2, %cst {dimension_numbers = #tpu.dot_dimension_numbers<[1], [0], [0], [1], [0, 0, 1, 1], [], []>} : vector<8x16xbf16>, vector<16x128xbf16>, vector<8x128xf32> -> vector<8x128xf32>
    %c0_3 = arith.constant 0 : index
    %c0_4 = arith.constant 0 : index
    %4 = vector.load %arg3[%c0_3, %c0_4] : memref<1x128xf32, #tpu.memory_space<vmem>>, vector<1x128xf32>
    %5 = vector.broadcast %4 : vector<1x128xf32> to vector<8x128xf32>
    %6 = arith.addf %3, %5 : vector<8x128xf32>
    %cst_5 = arith.constant 0.000000e+00 : f32
    %7 = vector.broadcast %cst_5 : f32 to vector<8x128xf32>
    %8 = arith.maximumf %6, %7 : vector<8x128xf32>
    %9 = arith.truncf %8 : vector<8x128xf32> to vector<8x128xbf16>
    %c0_6 = arith.constant 0 : index
    %c0_7 = arith.constant 0 : index
    %10 = vector.load %arg4[%c0_6, %c0_7] : memref<128x32xbf16, #tpu.memory_space<vmem>>, vector<128x32xbf16>
    %cst_8 = arith.constant dense<0.000000e+00> : vector<8x32xf32>
    %11 = tpu.matmul %9, %10, %cst_8 {dimension_numbers = #tpu.dot_dimension_numbers<[1], [0], [0], [1], [0, 0, 1, 1], [], []>} : vector<8x128xbf16>, vector<128x32xbf16>, vector<8x32xf32> -> vector<8x32xf32>
    %c0_9 = arith.constant 0 : index
    %c0_10 = arith.constant 0 : index
    %12 = vector.load %arg5[%c0_9, %c0_10] : memref<1x32xf32, #tpu.memory_space<vmem>>, vector<1x32xf32>
    %13 = vector.broadcast %12 : vector<1x32xf32> to vector<8x32xf32>
    %14 = arith.addf %11, %13 : vector<8x32xf32>
    %c0_11 = arith.constant 0 : index
    %c0_12 = arith.constant 0 : index
    %15 = vector.load %arg10[%c0_11, %c0_12] : memref<8x32xf32, #tpu.memory_space<vmem>>, vector<8x32xf32>
    tpu.vector_store %arg10[%c0_11, %c0_12], %14 {strides = array<i32>} : memref<8x32xf32, #tpu.memory_space<vmem>>, vector<8x32xf32>,
    %16 = arith.truncf %14 : vector<8x32xf32> to vector<8x32xbf16>
    %c0_13 = arith.constant 0 : index
    %c0_14 = arith.constant 0 : index
    %17 = vector.load %arg6[%c0_13, %c0_14] : memref<32x160xbf16, #tpu.memory_space<vmem>>, vector<32x160xbf16>
    %cst_15 = arith.constant dense<0.000000e+00> : vector<8x160xf32>
    %18 = tpu.matmul %16, %17, %cst_15 {dimension_numbers = #tpu.dot_dimension_numbers<[1], [0], [0], [1], [0, 0, 1, 1], [], []>} : vector<8x32xbf16>, vector<32x160xbf16>, vector<8x160xf32> -> vector<8x160xf32>
    %19 = vector.extract_strided_slice %18 {offsets = [0, 128], sizes = [8, 32], strides = [1, 1]} : vector<8x160xf32> to vector<8x32xf32>
    %c0_16 = arith.constant 0 : index
    %c0_17 = arith.constant 0 : index
    %20 = vector.load %arg11[%c0_16, %c0_17] : memref<8x32xf32, #tpu.memory_space<vmem>>, vector<8x32xf32>
    tpu.vector_store %arg11[%c0_16, %c0_17], %19 {strides = array<i32>} : memref<8x32xf32, #tpu.memory_space<vmem>>, vector<8x32xf32>,
    %21 = vector.extract_strided_slice %18 {offsets = [0, 0], sizes = [8, 128], strides = [1, 1]} : vector<8x160xf32> to vector<8x128xf32>
    %c0_18 = arith.constant 0 : index
    %c0_19 = arith.constant 0 : index
    %22 = vector.load %arg7[%c0_18, %c0_19] : memref<1x128xf32, #tpu.memory_space<vmem>>, vector<1x128xf32>
    %23 = vector.broadcast %22 : vector<1x128xf32> to vector<8x128xf32>
    %24 = arith.addf %21, %23 : vector<8x128xf32>
    %cst_20 = arith.constant 0.000000e+00 : f32
    %25 = vector.broadcast %cst_20 : f32 to vector<8x128xf32>
    %26 = arith.maximumf %24, %25 : vector<8x128xf32>
    %27 = arith.truncf %26 : vector<8x128xf32> to vector<8x128xbf16>
    %c0_21 = arith.constant 0 : index
    %c0_22 = arith.constant 0 : index
    %28 = vector.load %arg8[%c0_21, %c0_22] : memref<128x16xbf16, #tpu.memory_space<vmem>>, vector<128x16xbf16>
    %cst_23 = arith.constant dense<0.000000e+00> : vector<8x16xf32>
    %29 = tpu.matmul %27, %28, %cst_23 {dimension_numbers = #tpu.dot_dimension_numbers<[1], [0], [0], [1], [0, 0, 1, 1], [], []>} : vector<8x128xbf16>, vector<128x16xbf16>, vector<8x16xf32> -> vector<8x16xf32>
    %c0_24 = arith.constant 0 : index
    %c0_25 = arith.constant 0 : index
    %30 = vector.load %arg9[%c0_24, %c0_25] : memref<1x16xf32, #tpu.memory_space<vmem>>, vector<1x16xf32>
    %31 = vector.broadcast %30 : vector<1x16xf32> to vector<8x16xf32>
    %32 = arith.addf %29, %31 : vector<8x16xf32>
    %c0_26 = arith.constant 0 : index
    %c0_27 = arith.constant 0 : index
    %33 = vector.load %arg12[%c0_26, %c0_27] : memref<8x16xf32, #tpu.memory_space<vmem>>, vector<8x16xf32>
    tpu.vector_store %arg12[%c0_26, %c0_27], %32 {strides = array<i32>} : memref<8x16xf32, #tpu.memory_space<vmem>>, vector<8x16xf32>,
    return
  }
  func.func @transform_0(%arg0: i32) -> (i32, i32) {
    %c0_i32 = arith.constant 0 : i32
    %c0_i32_0 = arith.constant 0 : i32
    return %arg0, %c0_i32 : i32, i32
  }
  func.func @transform_1(%arg0: i32) -> (i32, i32) {
    %c0_i32 = arith.constant 0 : i32
    %c0_i32_0 = arith.constant 0 : i32
    %c0_i32_1 = arith.constant 0 : i32
    return %c0_i32, %c0_i32_0 : i32, i32
  }
  func.func @transform_2(%arg0: i32) -> (i32, i32) {
    %c0_i32 = arith.constant 0 : i32
    %c0_i32_0 = arith.constant 0 : i32
    %c0_i32_1 = arith.constant 0 : i32
    return %c0_i32, %c0_i32_0 : i32, i32
  }
  func.func @transform_3(%arg0: i32) -> (i32, i32) {
    %c0_i32 = arith.constant 0 : i32
    %c0_i32_0 = arith.constant 0 : i32
    %c0_i32_1 = arith.constant 0 : i32
    return %c0_i32, %c0_i32_0 : i32, i32
  }
  func.func @transform_4(%arg0: i32) -> (i32, i32) {
    %c0_i32 = arith.constant 0 : i32
    %c0_i32_0 = arith.constant 0 : i32
    %c0_i32_1 = arith.constant 0 : i32
    return %c0_i32, %c0_i32_0 : i32, i32
  }
  func.func @transform_5(%arg0: i32) -> (i32, i32) {
    %c0_i32 = arith.constant 0 : i32
    %c0_i32_0 = arith.constant 0 : i32
    %c0_i32_1 = arith.constant 0 : i32
    return %c0_i32, %c0_i32_0 : i32, i32
  }
  func.func @transform_6(%arg0: i32) -> (i32, i32) {
    %c0_i32 = arith.constant 0 : i32
    %c0_i32_0 = arith.constant 0 : i32
    %c0_i32_1 = arith.constant 0 : i32
    return %c0_i32, %c0_i32_0 : i32, i32
  }
  func.func @transform_7(%arg0: i32) -> (i32, i32) {
    %c0_i32 = arith.constant 0 : i32
    %c0_i32_0 = arith.constant 0 : i32
    %c0_i32_1 = arith.constant 0 : i32
    return %c0_i32, %c0_i32_0 : i32, i32
  }
  func.func @transform_8(%arg0: i32) -> (i32, i32) {
    %c0_i32 = arith.constant 0 : i32
    %c0_i32_0 = arith.constant 0 : i32
    %c0_i32_1 = arith.constant 0 : i32
    return %c0_i32, %c0_i32_0 : i32, i32
  }
  func.func @transform_9(%arg0: i32) -> (i32, i32) {
    %c0_i32 = arith.constant 0 : i32
    %c0_i32_0 = arith.constant 0 : i32
    return %arg0, %c0_i32 : i32, i32
  }
  func.func @transform_10(%arg0: i32) -> (i32, i32) {
    %c0_i32 = arith.constant 0 : i32
    %c0_i32_0 = arith.constant 0 : i32
    return %arg0, %c0_i32 : i32, i32
  }
  func.func @transform_11(%arg0: i32) -> (i32, i32) {
    %c0_i32 = arith.constant 0 : i32
    %c0_i32_0 = arith.constant 0 : i32
    return %arg0, %c0_i32 : i32, i32
  }
}

</mosaic_0001>

<bundles_post_ra>
// kernel: tpu_custom_call.1
= control target key start
LH: loop header
LB: loop body
LE: loop exit
PB: predicated region body
PF: predicated region fallthrough
CT: control target
= control target key end

     0   :  { %17 = vsyncpa [#allocation3], 0  ;;  %v639_v1 = vmov 0.0   ;;  %vm55_vm0 = vcmask 130048   ;;  %vm640_vm1 = vmmov 0   ;;  %s847_s0 = inlined_call_operand.vmem [shape: f32[8,16], index: 0, kind: input, shape index: {}]   ;;  %s848_s1 = inlined_call_operand.vmem [shape: bf16[16,128], index: 1, kind: input, shape index: {}]   ;;  %s849_s2 = inlined_call_operand.vmem [shape: f32[1,128], index: 2, kind: input, shape index: {}]   ;;  %s850_s3 = inlined_call_operand.vmem [shape: bf16[128,32], index: 3, kind: input, shape index: {}]   ;;  %s851_s4 = inlined_call_operand.vmem [shape: f32[1,32], index: 4, kind: input, shape index: {}]   ;;  %s852_s5 = inlined_call_operand.vmem [shape: bf16[32,160], index: 5, kind: input, shape index: {}]   ;;  %s853_s6 = inlined_call_operand.vmem [shape: f32[1,128], index: 6, kind: input, shape index: {}]   ;;  %s854_s7 = inlined_call_operand.vmem [shape: bf16[128,16], index: 7, kind: input, shape index: {}]   ;;  %s855_s8 = inlined_call_operand.vmem [shape: f32[1,16], index: 8, kind: input, shape index: {}]   ;;  %s856_s9 = inlined_call_operand.hbm [shape: f32[8,32], index: 9, kind: output, shape index: {0}]   ;;  %s857_s10 = inlined_call_operand.hbm [shape: f32[8,32], index: 10, kind: output, shape index: {1}]   ;;  %s858_s11 = inlined_call_operand.hbm [shape: f32[8,16], index: 11, kind: output, shape index: {2}]  }
   0x1   :  { %v546_v0 = vld [vmem:[%s848_s1] sm:$0xff]   ;;  %494 = vmatprep.subr.bf16.mxu1 %v639_v1  ;;  %496 = vmatprep.mubr.msk.bf16.mxu1 %vm640_vm1, %v639_v1  ;;  %v548_v5 = vld [vmem:[%s850_s3 + $0x8] sm:$0xff]   ;;  %v549_v6 = vld [vmem:[%s850_s3 + $0x10] sm:$0xff]  }
   0x2   :  { %v38_v2 = vld [vmem:[%s847_s0] sm:$0xff]  ;;  %495 = vmatpush3.bf16.msra.mxu1 %v546_v0  ;;  %v550_v7 = vld [vmem:[%s850_s3 + $0x18] sm:$0xff]  }
   0x3   :  { %v547_v3 = vld [vmem:[%s850_s3] sm:$0xff]   ;;  %v39_v4 = vpack.c.bf16 %v38_v2, %v38_v2  ;;  %500 = vmatprep.subr.bf16.mxu1 %v639_v1 }
   0x5   :  { %497 = vmatmul.mubr.msk.bf16.vlgmr.msra.gmra.mrb[0].mxu1 %vm55_vm0, %v39_v4 }
   0x6   :  { %501 = vmatpush3.bf16.msra.mxu1 %v547_v3  ;;  %516 = vmatprep.mubr.msk.bf16.mxu1 %vm640_vm1, %v639_v1 }
   0x7   :  { %502 = vmatprep.subr.bf16.mxu1 %v639_v1 }
   0xa   :  { %503 = vmatpush3.bf16.msra.mxu1 %v548_v5 }
   0xb   :  { %504 = vmatprep.subr.bf16.mxu1 %v639_v1 }
   0xe   :  { %505 = vmatpush3.bf16.msra.mxu1 %v549_v6 }
   0xf   :  { %506 = vmatprep.subr.bf16.mxu1 %v639_v1 }
  0x10   :  { %18 = vsyncpa [#allocation5], 0  ;;  %v551_v8 = vld [vmem:[%s850_s3 + $0x20] sm:$0xff]   ;;  %v552_v9 = vld [vmem:[%s850_s3 + $0x28] sm:$0xff]   ;;  %v641_v24 = vmov 0   ;;  %vm212_vm2 = vcmask 261120  }
  0x11   :  { %v553_v10 = vld [vmem:[%s850_s3 + $0x30] sm:$0xff]   ;;  %v554_v11 = vld [vmem:[%s850_s3 + $0x38] sm:$0xff]   ;;  %v555_v12 = vld [vmem:[%s852_s5 + $0x4] ss:$8 sps:$4 sm:$0xff]   ;;  %274 = vmatprep.mubr.bf16.mxu0 %v641_v24  ;;  %s642_s21 = smov [#allocation4]   ;;  %s643_s22 = smov [#allocation2]  }
  0x12   :  { %507 = vmatpush3.bf16.msra.mxu1 %v550_v7  ;;  %v557_v13 = vld [vmem:[%s852_s5] ss:$8 sps:$4 sm:$0xff]   ;;  %242 = vmatprep.subr.bf16.mxu0 %v555_v12  ;;  %v558_v22 = vld [vmem:[%s852_s5 + $0x14] ss:$8 sps:$4 sm:$0xff]   ;;  %v560_v23 = vld [vmem:[%s852_s5 + $0x10] ss:$8 sps:$4 sm:$0xff]  }
  0x13   :  { %508 = vmatprep.subr.bf16.mxu1 %v639_v1  ;;  %243 = vmatpush1.bf16.msra.mxu0 %v557_v13  ;;  %v447_v14 = vld [vmem:[%s849_s2] ss:$0 sm:$0xff]  ;;  %v562_v33 = vld [vmem:[%s854_s7 + $0x8] sm:$0xff]   ;;  %v563_v34 = vld [vmem:[%s854_s7 + $0x10] sm:$0xff]   ;;  %s422_s3 = sshll.u32 %s642_s21, 4  ;;  %s423_s3 = int_to_ptr.vmem [resolvable:$true] %s422_s3 }
  0x14   :  { %244 = vmatprep.subr.bf16.mxu0 %v558_v22  ;;  %v450_v25 = vld [vmem:[%s851_s4] ss:$0 sm:$0xff]  ;;  %v564_v35 = vld [vmem:[%s854_s7 + $0x18] sm:$0xff]   ;;  %v566_v37 = vld [vmem:[%s854_s7 + $0x28] sm:$0xff]   ;;  %s569_s1 = scalar_lea.vmem %s423_s3, 128  ;;  %p574_p1 = scmp.lt.s32.totalorder %s423_s3, %s423_s3 }
  0x15   :  { %v561_v30 = vld [vmem:[%s854_s7] sm:$0xff]   ;;  %v567_v38 = vld [vmem:[%s854_s7 + $0x30] sm:$0xff]   ;;  %v568_v39 = vld [vmem:[%s854_s7 + $0x38] sm:$0xff]   ;;  %p570_p0 = scmp.ne.s32.totalorder %s423_s3, %s569_s1  ;;  %p575_p2 = scmp.lt.s32.totalorder %s569_s1, %s569_s1 }
  0x16   :  { %509 = vmatpush3.bf16.msra.mxu1 %v551_v8  ;;  %v565_v36 = vld [vmem:[%s854_s7 + $0x20] sm:$0xff]   ;;  %s412_s7 = sshll.u32 %s643_s22, 4  ;;  %s413_s7 = int_to_ptr.vmem [resolvable:$true] %s412_s7 }
  0x17   :  { %510 = vmatprep.subr.bf16.mxu1 %v639_v1  ;;  %245 = vmatpush1.bf16.msra.mxu0 %v560_v23  ;;  %v464_v40 = vld [vmem:[%s853_s6] ss:$0 sm:$0xff]  ;;  %p576_p3 = por %p575_p2, %p574_p1 }
  0x18   :  { %520 = vmatprep.subr.bf16.mxu0 %v639_v1 }
  0x19   :  { %p577_p4 = pnand %p576_p3, %p570_p0 }
  0x1a   :  { %511 = vmatpush3.bf16.msra.mxu1 %v552_v9 }
  0x1b   :  { %512 = vmatprep.subr.bf16.mxu1 %v639_v1 }
  0x1e   :  { %513 = vmatpush3.bf16.msra.mxu1 %v553_v10 }
  0x1f   :  { %514 = vmatprep.subr.bf16.mxu1 %v639_v1 }
  0x22   :  { %515 = vmatpush3.bf16.msra.mxu1 %v554_v11 }
  0xd8   :  { %v93_v15 = vpop.f32.mrb[0].mxu1 }
  0xd9   :  { %v94_v16 = vadd.f32 %v447_v14, %v93_v15  ;;  %v498_v17 = vpop.f32.mrb[1].mxu1 }
  0xda   :  { %v96_v18 = vpop.f32.mrb[2].mxu1 }
  0xdb   :  { %v99_v19 = vmax.f32 %v94_v16, 0.0  ;;  %v499_v20 = vpop.f32.mrb[3].mxu1 }
  0xdd   :  { %v100_v21 = vpack.c.bf16 %v99_v19, %v99_v19 }
  0xdf   :  { %517 = vmatmul.mubr.bf16.vlgmr.msra.gmra.mrb[4].mxu1 %v100_v21 }
 0x1b2   :  { %v206_v26 = vpop.f32.mrb[4].mxu1 }
 0x1b3   :  { %v207_v27 = vadd.f32 %v450_v25, %v206_v26  ;;  %v518_v28 = vpop.f32.mrb[5].mxu1 }
 0x1b4   :  { %v209_v29 = vpop.f32.mrb[6].mxu1 }
 0x1b5   :  { %v214_v31 = vpack.c.bf16 %v207_v27, %v207_v27  ;;  %v519_v32 = vpop.f32.mrb[7].mxu1  ;;  %213 = vst.msk [vmem:[#allocation2] sm:$0xff] %vm212_vm2, %v207_v27 }
 0x1b7   :  { %463 = vmatmul.mubr.msk.bf16.vlgmr.msra.gmra.mrb[0].mxu0 %vm212_vm2, %v214_v31 }
 0x1b8   :  { %521 = vmatpush3.bf16.msra.mxu0 %v561_v30  ;;  %536 = vmatprep.mubr.msk.bf16.mxu0 %vm640_vm1, %v639_v1 }
 0x1b9   :  { %522 = vmatprep.subr.bf16.mxu0 %v639_v1 }
 0x1bc   :  { %523 = vmatpush3.bf16.msra.mxu0 %v562_v33 }
 0x1bd   :  { %524 = vmatprep.subr.bf16.mxu0 %v639_v1 }
 0x1c0   :  { %525 = vmatpush3.bf16.msra.mxu0 %v563_v34 }
 0x1c1   :  { %526 = vmatprep.subr.bf16.mxu0 %v639_v1 }
 0x1c4   :  { %527 = vmatpush3.bf16.msra.mxu0 %v564_v35 }
 0x1c5   :  { %528 = vmatprep.subr.bf16.mxu0 %v639_v1 }
 0x1c8   :  { %529 = vmatpush3.bf16.msra.mxu0 %v565_v36 }
 0x1c9   :  { %530 = vmatprep.subr.bf16.mxu0 %v639_v1 }
 0x1cc   :  { %531 = vmatpush3.bf16.msra.mxu0 %v566_v37 }
 0x1cd   :  { %532 = vmatprep.subr.bf16.mxu0 %v639_v1 }
 0x1d0   :  { %533 = vmatpush3.bf16.msra.mxu0 %v567_v38 }
 0x1d1   :  { %534 = vmatprep.subr.bf16.mxu0 %v639_v1 }
 0x1d4   :  { %535 = vmatpush3.bf16.msra.mxu0 %v568_v39 }
 0x28a   :  { %v276_v41 = vpop.f32.mrb[0].mxu0 }
 0x28b   :  { %v291_v42 = vadd.f32 %v464_v40, %v276_v41  ;;  %v278_v43 = vpop.f32.mrb[1].mxu0 }
 0x28c   :  { %283 = vst.msk [vmem:[#allocation4] sm:$0xff] %vm212_vm2, %v278_v43  ;;  %v280_v44 = vpop.f32.mrb[2].mxu0 }
 0x28d   :  { %v292_v45 = vmax.f32 %v291_v42, 0.0  ;;  %v281_v46 = vpop.f32.mrb[3].mxu0 }
 0x28f   :  { %v293_v47 = vpack.c.bf16 %v292_v45, %v292_v45 }
 0x291   :  { %537 = vmatmul.mubr.bf16.vlgmr.msra.gmra.mrb[4].mxu0 %v293_v47 }
 0x292   :  { %580 = shalt.err (!%p577_p4)
}
 0x293   :  { %s581_s2 = scalar_lea.hbm %s857_s10, 128 }
 0x294   :  { %p582_p5 = scmp.ne.s32.totalorder %s857_s10, %s581_s2  ;;  %p585_p6 = scmp.lt.u32.totalorder %s581_s2, %s857_s10 }
 0x296   :  { %p587_p7 = pnand %p585_p6, %p582_p5 }
 0x298   :  { %590 = shalt.err (!%p587_p7)
}
 0x299   :  { %425 = dma.vmem_to_hbm [thread:$0]  %s423_s3, 128, %s857_s10, [#allocation5]  }
 0x29a   :  { %s591_s27 = scalar_lea.vmem %s413_s7, 128  ;;  %p596_p9 = scmp.lt.s32.totalorder %s413_s7, %s413_s7 }
 0x29b   :  { %p592_p8 = scmp.ne.s32.totalorder %s413_s7, %s591_s27  ;;  %p597_p10 = scmp.lt.s32.totalorder %s591_s27, %s591_s27 }
 0x29d   :  { %p598_p11 = por %p597_p10, %p596_p9 }
 0x29f   :  { %p599_p12 = pnand %p598_p11, %p592_p8 }
 0x2a1   :  { %602 = shalt.err (!%p599_p12)
}
 0x2a2   :  { %s603_s30 = scalar_lea.hbm %s856_s9, 128 }
 0x2a3   :  { %p604_p13 = scmp.ne.s32.totalorder %s856_s9, %s603_s30  ;;  %p607_p0 = scmp.lt.u32.totalorder %s603_s30, %s856_s9 }
 0x2a5   :  { %p609_p1 = pnand %p607_p0, %p604_p13 }
 0x2a7   :  { %612 = shalt.err (!%p609_p1)
}
 0x2a8   :  { %415 = dma.vmem_to_hbm [thread:$0]  %s413_s7, 128, %s856_s9, [#allocation3]   ;;  %v465_v48 = vld [vmem:[%s855_s8] ss:$0 sm:$0xff] }
 0x2a9   :  { %s644_s19 = smov [#allocation6]  }
 0x2aa   :  { %s432_s20 = sshll.u32 %s644_s19, 4  ;;  %s433_s20 = int_to_ptr.vmem [resolvable:$true] %s432_s20 }
 0x2ab   :  { %s613_s21 = scalar_lea.vmem %s433_s20, 128  ;;  %p618_p3 = scmp.lt.s32.totalorder %s433_s20, %s433_s20 }
 0x2ac   :  { %p614_p2 = scmp.ne.s32.totalorder %s433_s20, %s613_s21  ;;  %p619_p4 = scmp.lt.s32.totalorder %s613_s21, %s613_s21 }
 0x2ae   :  { %p620_p5 = por %p619_p4, %p618_p3 }
 0x2b0   :  { %p621_p6 = pnand %p620_p5, %p614_p2 }
 0x364   :  { %v399_v49 = vpop.f32.mrb[4].mxu0 }
 0x365   :  { %v400_v50 = vadd.f32 %v465_v48, %v399_v49  ;;  %v538_v51 = vpop.f32.mrb[5].mxu0 }
 0x366   :  { %v402_v52 = vpop.f32.mrb[6].mxu0 }
 0x367   :  { %405 = vst.msk [vmem:[#allocation6] sm:$0xff] %vm55_vm0, %v400_v50  ;;  %v539_v53 = vpop.f32.mrb[7].mxu0 }
 0x368   :  { %624 = shalt.err (!%p621_p6)
}
 0x369   :  { %s625_s8 = scalar_lea.hbm %s858_s11, 128 }
 0x36a   :  { %p626_p7 = scmp.ne.s32.totalorder %s858_s11, %s625_s8  ;;  %p629_p8 = scmp.lt.u32.totalorder %s625_s8, %s858_s11 }
 0x36c   :  { %p631_p9 = pnand %p629_p8, %p626_p7 }
 0x36e   :  { %634 = shalt.err (!%p631_p9)
}
 0x36f   :  { %435 = dma.vmem_to_hbm [thread:$0]  %s433_s20, 128, %s858_s11, [#allocation5]  }
 0x370   :  { %635 = dma.done.wait [#allocation3], 128  }
 0x371   :  { %636 = vsyncadd [#allocation3], 4294967168 }
 0x372   :  { %637 = dma.done.wait [#allocation5], 256  }
 0x373   :  { %638 = vsyncadd [#allocation5], 4294967040 }
 0x374   :  { %445 = vsyncpa [#allocation3], 1 }
 0x375   :  { %446 = vsyncpa [#allocation5], 1 }

</bundles_post_ra>
